<compile_context>
chip_gen: v7x
topology: tpu7x:2x2x1
jax: 0.10.0
libtpu: 0.0.40
codegen_flags: <defaults>
</compile_context>

<pallas_src>
import functools

import jax
import jax.numpy as jnp
from jax.experimental import pallas as pl
from jax.experimental.pallas import tpu as pltpu


def _cdiv(a, b):
    return (a + b - 1) // b


def _round_up(a, b):
    return _cdiv(a, b) * b


def _tpu_generation_params():
    """Returns (input_vmem_budget_bytes, vmem_limit_bytes, two_tensorcores)."""
    vmem_cap = None
    try:
        vmem_cap = int(getattr(pltpu.get_tpu_info(), "vmem_capacity_bytes", 0)) or None
    except Exception:
        vmem_cap = None
    if vmem_cap is None:
        try:
            kind = jax.devices()[0].device_kind.lower()
        except Exception:
            kind = ""
        vmem_cap = 64 * 1024 * 1024 if "v7" in kind else 128 * 1024 * 1024
    if vmem_cap <= 80 * 1024 * 1024:
        # v7x: 64 MiB physical VMEM, 2 TensorCores per chip.
        return 16 * 1024 * 1024, 40 * 1024 * 1024, True
    # v5e / v6e: 128 MiB physical VMEM, single TensorCore.
    return 24 * 1024 * 1024, 56 * 1024 * 1024, False


# ----------------------------------------------------------------------------
# Kernels
# ----------------------------------------------------------------------------
def _cce_rowsum_kernel(*refs, has_cw, has_w, eps):
    """Single class tile (block_c == C).  grid = (row_tiles,).

    refs: cls (TN, C), lbl (TN, C), [cw (1, C)], [w (TN, 1)], out (TN, 1)
    """
    it = iter(refs)
    cls_ref = next(it)
    lbl_ref = next(it)
    cw_ref = next(it) if has_cw else None
    w_ref = next(it) if has_w else None
    out_ref = next(it)

    x = jnp.clip(cls_ref[...].astype(jnp.float32), eps, 1.0 - eps)
    p = lbl_ref[...].astype(jnp.float32) * jnp.log(x)
    if has_cw:
        p = p * cw_ref[...].astype(jnp.float32)
    row = jnp.sum(p, axis=-1, keepdims=True)           # (TN, 1)
    # Negation + sample weight folded into the per-row finalize (1 lane wide).
    if has_w:
        out_ref[...] = -row * w_ref[...]
    else:
        out_ref[...] = -row


def _cce_tiled_kernel(*refs, has_cw, has_w, eps, num_classes):
    """Class-tiled path for large C.  grid = (row_tiles, class_tiles).

    refs: cls (TN, TC), lbl (TN, TC), [cw (1, TC)], [w (TN, 1)], out (TN, 1)
    The f32 out_ref doubles as the partial-sum accumulator (resident across
    the 'arbitrary' class axis).
    """
    it = iter(refs)
    cls_ref = next(it)
    lbl_ref = next(it)
    cw_ref = next(it) if has_cw else None
    w_ref = next(it) if has_w else None
    out_ref = next(it)

    ci = pl.program_id(1)

    @pl.when(ci == 0)
    def _init():
        out_ref[...] = jnp.zeros_like(out_ref)

    x = cls_ref[...].astype(jnp.float32)
    lbl = lbl_ref[...].astype(jnp.float32)
    block_c = x.shape[-1]
    if num_classes % block_c != 0:
        # Mask ragged lanes of the last class tile BEFORE the log so garbage
        # lanes cannot produce NaN/Inf that poison the class sum.
        lane = jax.lax.broadcasted_iota(jnp.int32, (1, block_c), 1)
        valid = (ci * block_c + lane) < num_classes
        x = jnp.where(valid, x, 1.0)
        lbl = jnp.where(valid, lbl, 0.0)
    x = jnp.clip(x, eps, 1.0 - eps)
    p = lbl * jnp.log(x)
    if has_cw:
        p = p * cw_ref[...].astype(jnp.float32)         # padded cw lanes are 0
    out_ref[...] += jnp.sum(p, axis=-1, keepdims=True)

    @pl.when(ci == pl.num_programs(1) - 1)
    def _finalize():
        if has_w:
            out_ref[...] = -out_ref[...] * w_ref[...]
        else:
            out_ref[...] = -out_ref[...]


# ----------------------------------------------------------------------------
# Wrapper
# ----------------------------------------------------------------------------
def categorical_cross_entropy_loss(
    cls_score,
    label_score,
    weight=None,
    class_weight=None,
    avg_factor=None,
    reduction="mean",
    loss_weight=1.0,
    eps=1e-9,
    max_lane_tile=2048,
):
    """JAX/Pallas equivalent of CategoricalCrossEntropyLoss.forward."""
    assert reduction in ("none", "mean", "sum")
    assert max_lane_tile % 128 == 0

    lead_shape = cls_score.shape[:-1]
    C = cls_score.shape[-1]
    N = 1
    for d in lead_shape:
        N *= d

    # Free (bitcast) reshapes; the big streams stay in their native dtype and
    # are NEVER padded/materialized in HBM by the wrapper.
    cls2 = cls_score.reshape(N, C)
    lbl2 = label_score.reshape(N, C)

    has_cw = class_weight is not None
    has_w = weight is not None

    input_budget, vmem_limit, two_tc = _tpu_generation_params()

    # --- class (lane) axis ---------------------------------------------------
    if C <= max_lane_tile:
        block_c, kc = C, 1            # block == full last dim -> no (8,128) rule
    else:
        block_c = max_lane_tile       # multiple of 128
        kc = _cdiv(C, block_c)

    # --- row (sublane) axis --------------------------------------------------
    # Size with an f32-equivalent footprint (2 streams x 2 pipeline buffers)
    # so in-kernel f32 casts of bf16 inputs always leave VMEM headroom.
    c_eff = _round_up(block_c, 128)
    block_n = input_budget // (2 * 2 * c_eff * 4)
    block_n = max(8, min(block_n, 8192))
    block_n = min(block_n, _round_up(N, 8))
    block_n = max(8, (block_n // 8) * 8)
    if two_tc:
        # Only on the 2-TensorCore generation: give each core work and keep
        # the row-tile count even so both cores get equal shares.
        n_tiles = _cdiv(N, block_n)
        if n_tiles == 1 and N >= 256:
            n_tiles = 2
        elif n_tiles > 1 and n_tiles % 2 == 1:
            n_tiles += 1
        block_n = max(8, _round_up(_cdiv(N, n_tiles), 8))
    n_row_tiles = _cdiv(N, block_n)

    # --- tiny side inputs ----------------------------------------------------
    args = [cls2, lbl2]
    if kc == 1:
        in_specs = [
            pl.BlockSpec((block_n, block_c), lambda i: (i, 0)),
            pl.BlockSpec((block_n, block_c), lambda i: (i, 0)),
        ]
        if has_cw:
            cw = jnp.asarray(class_weight, jnp.float32).reshape(1, C)
            args.append(cw)
            in_specs.append(pl.BlockSpec((1, block_c), lambda i: (0, 0)))
        if has_w:
            w = jnp.asarray(weight, jnp.float32).reshape(N, 1)
            args.append(w)
            in_specs.append(pl.BlockSpec((block_n, 1), lambda i: (i, 0)))
        out_spec = pl.BlockSpec((block_n, 1), lambda i: (i, 0))
        grid = (n_row_tiles,)
        dim_sem = ("parallel",)
        kernel = functools.partial(_cce_rowsum_kernel,
                                   has_cw=has_cw, has_w=has_w, eps=eps)
    else:
        in_specs = [
            pl.BlockSpec((block_n, block_c), lambda i, c: (i, c)),
            pl.BlockSpec((block_n, block_c), lambda i, c: (i, c)),
        ]
        if has_cw:
            cw = jnp.asarray(class_weight, jnp.float32).reshape(1, C)
            cw = jnp.pad(cw, ((0, 0), (0, kc * block_c - C)))   # tiny pad only
            args.append(cw)
            in_specs.append(pl.BlockSpec((1, block_c), lambda i, c: (0, c)))
        if has_w:
            w = jnp.asarray(weight, jnp.float32).reshape(N, 1)
            args.append(w)
            in_specs.append(pl.BlockSpec((block_n, 1), lambda i, c: (i, 0)))
        out_spec = pl.BlockSpec((block_n, 1), lambda i, c: (i, 0))
        grid = (n_row_tiles, kc)
        dim_sem = ("parallel", "arbitrary")
        kernel = functools.partial(_cce_tiled_kernel,
                                   has_cw=has_cw, has_w=has_w, eps=eps,
                                   num_classes=C)

    per_row = pl.pallas_call(
        kernel,
        out_shape=jax.ShapeDtypeStruct((N, 1), jnp.float32),
        grid_spec=pltpu.PrefetchScalarGridSpec(
            num_scalar_prefetch=0,
            grid=grid,
            in_specs=in_specs,
            out_specs=out_spec,
        ),
        compiler_params=pltpu.CompilerParams(
            dimension_semantics=dim_sem,
            vmem_limit_bytes=vmem_limit,
        ),
    )(*args)

    per_row = per_row.reshape(N)

    # Final scalar reduction (glue, matches mmdet weight_reduce_loss).
    if reduction == "none":
        loss = per_row.reshape(lead_shape)
    elif avg_factor is None:
        loss = jnp.mean(per_row) if reduction == "mean" else jnp.sum(per_row)
    elif reduction == "mean":
        loss = jnp.sum(per_row) / avg_factor
    else:
        raise ValueError('avg_factor can not be used with reduction="sum"')

    return loss_weight * loss


# ----------------------------------------------------------------------------
# Reference + tests
# ----------------------------------------------------------------------------
def _reference(cls_score, label_score, weight, class_weight, reduction,
               loss_weight, avg_factor, eps=1e-9):
    x = jnp.clip(cls_score.astype(jnp.float32), eps, 1.0 - eps)
    loss = -(label_score.astype(jnp.float32) * jnp.log(x))
    if class_weight is not None:
        loss = loss * jnp.asarray(class_weight, jnp.float32)
    loss = loss.sum(-1)
    if weight is not None:
        loss = loss * weight.astype(jnp.float32)
    if reduction == "none":
        out = loss
    elif avg_factor is None:
        out = loss.mean() if reduction == "mean" else loss.sum()
    else:
        out = loss.sum() / avg_factor
    return loss_weight * out


if __name__ == "__main__":
    key = jax.random.PRNGKey(0)
    k1, k2, k3, k4, k5, k6, k7, k8 = jax.random.split(key, 8)

    # --- test 1: f32 probs, sample + class weights, mean reduction ----------
    B, S, C = 2, 8, 32
    cls_score = jax.nn.softmax(jax.random.normal(k1, (B, S, C)), axis=-1)
    label_score = jax.nn.softmax(jax.random.normal(k2, (B, S, C)), axis=-1)
    sample_weight = jax.random.uniform(k3, (B, S), minval=0.5, maxval=1.5)
    class_weight = jnp.linspace(0.5, 1.5, C, dtype=jnp.float32)

    loss = categorical_cross_entropy_loss(
        cls_score, label_score, weight=sample_weight,
        class_weight=class_weight, reduction="mean", loss_weight=1.0)
    loss = jax.block_until_ready(loss)
    ref = _reference(cls_score, label_score, sample_weight, class_weight,
                     reduction="mean", loss_weight=1.0, avg_factor=None)
    assert jnp.allclose(loss, ref, rtol=1e-5, atol=1e-6), (loss, ref)

    # --- test 2: bf16 probs (native-dtype streaming), ragged N & C, sum -----
    B2, S2, C2 = 2, 7, 30
    cls_b = jax.nn.softmax(jax.random.normal(k4, (B2, S2, C2)), axis=-1).astype(jnp.bfloat16)
    lbl_b = jax.nn.softmax(jax.random.normal(k5, (B2, S2, C2)), axis=-1).astype(jnp.bfloat16)

    loss2 = categorical_cross_entropy_loss(
        cls_b, lbl_b, weight=None, class_weight=None,
        reduction="sum", loss_weight=2.0)
    loss2 = jax.block_until_ready(loss2)
    ref2 = _reference(cls_b, lbl_b, None, None, reduction="sum",
                      loss_weight=2.0, avg_factor=None)
    assert jnp.allclose(loss2, ref2, rtol=1e-4, atol=1e-5), (loss2, ref2)

    # --- test 3: forced class-tiled path (ragged last class tile), avg_factor
    B3, S3, C3 = 2, 8, 200
    cls_t = jax.nn.softmax(jax.random.normal(k6, (B3, S3, C3)), axis=-1)
    lbl_t = jax.nn.softmax(jax.random.normal(k7, (B3, S3, C3)), axis=-1)
    w_t = jax.random.uniform(k8, (B3, S3), minval=0.5, maxval=1.5)
    cw_t = jnp.linspace(0.25, 1.75, C3, dtype=jnp.float32)

    loss3 = categorical_cross_entropy_loss(
        cls_t, lbl_t, weight=w_t, class_weight=cw_t,
        reduction="mean", loss_weight=0.5, avg_factor=13.0,
        max_lane_tile=128)                      # kc=2, last tile 72/128 valid
    loss3 = jax.block_until_ready(loss3)
    ref3 = _reference(cls_t, lbl_t, w_t, cw_t, reduction="mean",
                      loss_weight=0.5, avg_factor=13.0)
    assert jnp.allclose(loss3, ref3, rtol=1e-5, atol=1e-6), (loss3, ref3)

    print("KERNEL_OK")
</pallas_src>

<mosaic_0001>
module attributes {stable_mosaic.version = 11 : i64} {
  func.func @_cce_rowsum_kernel(%arg0: i32, %arg1: memref<16x32xf32, #tpu.memory_space<vmem>>, %arg2: memref<16x32xf32, #tpu.memory_space<vmem>>, %arg3: memref<1x32xf32, #tpu.memory_space<vmem>>, %arg4: memref<16x1xf32, #tpu.memory_space<vmem>>, %arg5: memref<16x1xf32, #tpu.memory_space<vmem>>) attributes {dimension_semantics = [#tpu.dimension_semantics<parallel>], iteration_bounds = array<i64: 1>, scalar_prefetch = 0 : i64, scratch_operands = 0 : i64, tpu.core_type = #tpu.core_type<tc>, window_params = [{transform_indices = @transform_0, window_bounds = array<i64: 16, 32>}, {transform_indices = @transform_1, window_bounds = array<i64: 16, 32>}, {pipeline_mode = #tpu.pipeline_mode<synchronous>, transform_indices = @transform_2, window_bounds = array<i64: 1, 32>}, {transform_indices = @transform_3, window_bounds = array<i64: 16, 1>}, {transform_indices = @transform_4, window_bounds = array<i64: 16, 1>}]} {
    %c0 = arith.constant 0 : index
    %c0_0 = arith.constant 0 : index
    %0 = vector.load %arg1[%c0, %c0_0] : memref<16x32xf32, #tpu.memory_space<vmem>>, vector<16x32xf32>
    %cst = arith.constant 9.99999971E-10 : f32
    %cst_1 = arith.constant 1.000000e+00 : f32
    %1 = vector.broadcast %cst : f32 to vector<16x32xf32>
    %2 = arith.maximumf %1, %0 : vector<16x32xf32>
    %3 = vector.broadcast %cst_1 : f32 to vector<16x32xf32>
    %4 = arith.minimumf %3, %2 : vector<16x32xf32>
    %c0_2 = arith.constant 0 : index
    %c0_3 = arith.constant 0 : index
    %5 = vector.load %arg2[%c0_2, %c0_3] : memref<16x32xf32, #tpu.memory_space<vmem>>, vector<16x32xf32>
    %6 = math.log %4 : vector<16x32xf32>
    %7 = arith.mulf %5, %6 : vector<16x32xf32>
    %c0_4 = arith.constant 0 : index
    %c0_5 = arith.constant 0 : index
    %8 = vector.load %arg3[%c0_4, %c0_5] : memref<1x32xf32, #tpu.memory_space<vmem>>, vector<1x32xf32>
    %9 = vector.broadcast %8 : vector<1x32xf32> to vector<16x32xf32>
    %10 = arith.mulf %7, %9 : vector<16x32xf32>
    %cst_6 = arith.constant dense<0.000000e+00> : vector<16xf32>
    %11 = vector.multi_reduction <add>, %10, %cst_6 [1] : vector<16x32xf32> to vector<16xf32>
    %12 = vector.shape_cast %11 : vector<16xf32> to vector<16x1xf32>
    %cst_7 = arith.constant 0.000000e+00 : f32
    %13 = vector.broadcast %cst_7 : f32 to vector<16x1xf32>
    %14 = arith.subf %13, %12 : vector<16x1xf32>
    %c0_8 = arith.constant 0 : index
    %c0_9 = arith.constant 0 : index
    %15 = vector.load %arg4[%c0_8, %c0_9] : memref<16x1xf32, #tpu.memory_space<vmem>>, vector<16x1xf32>
    %16 = arith.mulf %14, %15 : vector<16x1xf32>
    %c0_10 = arith.constant 0 : index
    %c0_11 = arith.constant 0 : index
    %17 = vector.load %arg5[%c0_10, %c0_11] : memref<16x1xf32, #tpu.memory_space<vmem>>, vector<16x1xf32>
    tpu.vector_store %arg5[%c0_10, %c0_11], %16 {strides = array<i32>} : memref<16x1xf32, #tpu.memory_space<vmem>>, vector<16x1xf32>,
    return
  }
  func.func @transform_0(%arg0: i32) -> (i32, i32) {
    %c0_i32 = arith.constant 0 : i32
    %c0_i32_0 = arith.constant 0 : i32
    return %arg0, %c0_i32 : i32, i32
  }
  func.func @transform_1(%arg0: i32) -> (i32, i32) {
    %c0_i32 = arith.constant 0 : i32
    %c0_i32_0 = arith.constant 0 : i32
    return %arg0, %c0_i32 : i32, i32
  }
  func.func @transform_2(%arg0: i32) -> (i32, i32) {
    %c0_i32 = arith.constant 0 : i32
    %c0_i32_0 = arith.constant 0 : i32
    %c0_i32_1 = arith.constant 0 : i32
    return %c0_i32, %c0_i32_0 : i32, i32
  }
  func.func @transform_3(%arg0: i32) -> (i32, i32) {
    %c0_i32 = arith.constant 0 : i32
    %c0_i32_0 = arith.constant 0 : i32
    return %arg0, %c0_i32 : i32, i32
  }
  func.func @transform_4(%arg0: i32) -> (i32, i32) {
    %c0_i32 = arith.constant 0 : i32
    %c0_i32_0 = arith.constant 0 : i32
    return %arg0, %c0_i32 : i32, i32
  }
}

</mosaic_0001>

<bundles_post_ra>
// kernel: tpu_custom_call.1
= control target key start
LH: loop header
LB: loop body
LE: loop exit
PB: predicated region body
PF: predicated region fallthrough
CT: control target
= control target key end

     0   :  { %9 = vsyncpa [#allocation3], 0  ;;  %s107_s15 = smov [#allocation2]   ;;  %s168_s0 = inlined_call_operand.vmem [shape: f32[16,32], index: 0, kind: input, shape index: {}]   ;;  %s169_s1 = inlined_call_operand.hbm [shape: f32[16,32], index: 1, kind: input, shape index: {}]   ;;  %s170_s2 = inlined_call_operand.vmem [shape: f32[1,32], index: 2, kind: input, shape index: {}]   ;;  %s171_s3 = inlined_call_operand.vmem [shape: f32[16,1], index: 3, kind: input, shape index: {}]   ;;  %s172_s4 = inlined_call_operand.vmem [shape: f32[16,1], index: 4, kind: output, shape index: {}]  }
   0x1   :  { %s17_s16 = sshll.u32 %s107_s15, 4  ;;  %s83_s19 = scalar_lea.hbm %s169_s1, 256  ;;  %s18_s16 = int_to_ptr.vmem [resolvable:$true] %s17_s16 }
   0x2   :  { %p84_p0 = scmp.ne.s32.totalorder %s169_s1, %s83_s19  ;;  %p87_p1 = scmp.lt.u32.totalorder %s83_s19, %s169_s1 }
   0x4   :  { %p89_p2 = pnand %p87_p1, %p84_p0 }
   0x6   :  { %92 = shalt.err (!%p89_p2)
}
   0x7   :  { %s93_s24 = scalar_lea.vmem %s18_s16, 256  ;;  %p98_p4 = scmp.lt.s32.totalorder %s18_s16, %s18_s16 }
   0x8   :  { %p94_p3 = scmp.ne.s32.totalorder %s18_s16, %s93_s24  ;;  %p99_p5 = scmp.lt.s32.totalorder %s93_s24, %s93_s24 }
   0xa   :  { %p100_p6 = por %p99_p5, %p98_p4 }
   0xc   :  { %p101_p7 = pnand %p100_p6, %p94_p3 }
   0xe   :  { %104 = shalt.err (!%p101_p7)
}
   0xf   :  { %s108_s25 = smov 128   ;;  %s109_s26 = smov 8  }
  0x10   :  { %23 = dma.hbm_to_vmem [thread:$0]  %s169_s1, 256, %s18_s16, [#allocation3], %s108_s25, %s108_s25, %s109_s26  }
  0x11   :  { %105 = dma.done.wait [#allocation3], 256  }
  0x12   :  { %106 = vsyncadd [#allocation3], 4294967040  ;;  %v31_v0 = vld [vmem:[%s168_s0] sm:$0xff]  ;;  %v32_v2 = vld [vmem:[%s168_s0 + $0x8] sm:$0xff]  ;;  %vm54_vm0 = vcmask 261120   ;;  %vm67_vm1 = vcmask 7168  }
  0x13   :  { %v33_v1 = vmax.f32 %v31_v0, 1e-09  ;;  %v34_v3 = vmax.f32 %v32_v2, 1e-09  ;;  %v37_v7 = vld [vmem:[#allocation2] sm:$0xff]  ;;  %v38_v10 = vld [vmem:[#allocation2 + $0x8] sm:$0xff] }
  0x14   :  { %v75_v11 = vld [vmem:[%s170_s2] ss:$0 sm:$0xff]  ;;  %v64_v23 = vld [vmem:[%s171_s3 + $0x8] sm:$0xff] }
  0x15   :  { %v35_v4 = vmin.f32 %v33_v1, 1.0  ;;  %v36_v5 = vmin.f32 %v34_v3, 1.0  ;;  %v63_v19 = vld [vmem:[%s171_s3] sm:$0xff] }
  0x17   :  { %79 = vlog2.f32 %v35_v4 }
  0x18   :  { %81 = vlog2.f32 %v36_v5 }
  0x21   :  { %v80_v6 = vpop.eup %79 }
  0x22   :  { %v82_v8 = vpop.eup %81  ;;  %v40_v9 = vmul.f32 0.6931472, %v80_v6 }
  0x23   :  { %v42_v12 = vmul.f32 0.6931472, %v82_v8 }
  0x24   :  { %v43_v13 = vmul.f32 %v40_v9, %v37_v7 }
  0x25   :  { %v44_v14 = vmul.f32 %v42_v12, %v38_v10 }
  0x26   :  { %v52_v15 = vmul.f32 %v75_v11, %v43_v13 }
  0x27   :  { %v53_v16 = vmul.f32 %v75_v11, %v44_v14 }
  0x28   :  { %v55_v17 = vsel %vm54_vm0, %v52_v15, 0.0 }
  0x29   :  { %56 = vadd.xlane.f32.xlu0 %v55_v17  ;;  %v58_v18 = vsel %vm54_vm0, %v53_v16, 0.0 }
  0x2d   :  { %59 = vadd.xlane.f32.xlu0 %v58_v18 }
  0xb6   :  { %v57_v20 = vpop.xlane.xlu0 %56 }
  0xb7   :  { %v61_v21 = vsub.f32 0.0, %v57_v20 }
  0xb9   :  { %v65_v22 = vmul.f32 %v63_v19, %v61_v21 }
  0xba   :  { %v60_v24 = vpop.xlane.xlu0 %59 }
  0xbb   :  { %68 = vst.msk [vmem:[%s172_s4] sm:$0xff] %vm67_vm1, %v65_v22  ;;  %v62_v25 = vsub.f32 0.0, %v60_v24 }
  0xbd   :  { %v66_v26 = vmul.f32 %v64_v23, %v62_v25 }
  0xbf   :  { %69 = vst.msk [vmem:[%s172_s4 + $0x8] sm:$0xff] %vm67_vm1, %v66_v26 }
  0xc0   :  { %74 = vsyncpa [#allocation3], 1 }

</bundles_post_ra>
